<compile_context>
chip_gen: v7x
topology: tpu7x:2x2x1
jax: 0.10.0
libtpu: 0.0.40
codegen_flags: <defaults>
</compile_context>

<pallas_src>
import jax
import jax.numpy as jnp
from jax.experimental import pallas as pl
from jax.experimental.pallas import tpu as pltpu


def _round_up(v, m):
    return ((v + m - 1) // m) * m


def _pad_axis(a, axis, target):
    cur = a.shape[axis]
    if cur == target:
        return a
    pads = [(0, 0)] * a.ndim
    pads[axis] = (0, target - cur)
    return jnp.pad(a, pads)


def _mhl_reference(x, weight, bias):
    """Pure-JAX reference (also the tiny-shape fallback path)."""
    if x.ndim == 3:
        y = jnp.einsum("bhk,hkn->bhn", x, weight,
                       precision=jax.lax.Precision.HIGHEST)
    else:
        y = jnp.einsum("bk,hkn->bhn", x, weight,
                       precision=jax.lax.Precision.HIGHEST)
    if bias is not None:
        y = y + jnp.swapaxes(bias, 0, 1)  # (1, H, N) broadcasts over batch
    return y


def _mhl_kernel(x_ref, w_ref, b_ref, o_ref, acc_ref):
    """One (tm, tn) output tile of one head; K reduction over grid axis 3."""
    k = pl.program_id(3)

    @pl.when(k == 0)
    def _():
        acc_ref[...] = jnp.zeros_like(acc_ref)

    acc_ref[...] += jnp.dot(
        x_ref[...], w_ref[...], preferred_element_type=jnp.float32
    )

    @pl.when(k == pl.num_programs(3) - 1)
    def _():
        o_ref[...] = (acc_ref[...] + b_ref[...].astype(jnp.float32)).astype(
            o_ref.dtype
        )


def multi_head_linear(
    x,
    weight,
    bias=None,
    *,
    compute_dtype=jnp.bfloat16,
    tm=None,
    tn=None,
    tk=None,
    force_pallas=False,
):
    """Pallas forward of MultiHeadLinear (HCE=False, binarize=False).

    x      : (batch, n_heads, in_feats)  or  (batch, in_feats)
    weight : (n_heads, in_feats, out_feats)
    bias   : (n_heads, 1, out_feats) or None
    returns: (batch, n_heads, out_feats), dtype of x
    """
    n_heads, in_feats, out_feats = weight.shape
    batch = x.shape[0]
    if x.ndim == 3:
        assert x.shape == (batch, n_heads, in_feats)
    else:
        assert x.shape == (batch, in_feats)
    out_dtype = x.dtype

    # --- tiny-problem fallback: per-step overhead dominates a Pallas call ---
    flops = 2 * n_heads * batch * in_feats * out_feats
    if not force_pallas and flops < (1 << 24):
        return _mhl_reference(x, weight, bias).astype(out_dtype)

    # --- tile sizes (VMEM-safe on v5e / v6e / v7x scoped defaults) ----------
    if tm is None:
        tm = min(256, _round_up(batch, 8))
    if tn is None:
        tn = min(512, _round_up(out_feats, 128))
    if tk is None:
        tk = min(512, _round_up(in_feats, 128))

    bp = _round_up(batch, tm)
    np_ = _round_up(out_feats, tn)
    kp = _round_up(in_feats, tk)
    m_tiles, n_tiles, k_tiles = bp // tm, np_ // tn, kp // tk

    cdt = compute_dtype if compute_dtype is not None else weight.dtype

    # --- pad operands to tile multiples (lane-dense blocks) -----------------
    w_p = _pad_axis(_pad_axis(weight, 1, kp), 2, np_).astype(cdt)
    if bias is None:
        b_p = jnp.zeros((n_heads, 1, np_), jnp.float32)
    else:
        b_p = _pad_axis(bias, 2, np_).astype(jnp.float32)

    if x.ndim == 3:
        x_p = _pad_axis(_pad_axis(x, 0, bp), 2, kp).astype(cdt)
        # Free trailing-dim collapse: (Bp, H, Kp) -> (Bp, H*Kp); the head
        # "transpose" becomes pure index arithmetic in the index_map.
        x2 = x_p.reshape(bp, n_heads * kp)
        x_spec = pl.BlockSpec((tm, tk), lambda h, m, n, k: (m, h * k_tiles + k))
    else:
        x_p = _pad_axis(_pad_axis(x, 0, bp), 1, kp).astype(cdt)
        x2 = x_p
        # Shared activation: block index independent of the head axis, so the
        # pipeline does not re-fetch x when only h changes.
        x_spec = pl.BlockSpec((tm, tk), lambda h, m, n, k: (m, k))

    grid = (n_heads, m_tiles, n_tiles, k_tiles)

    bytes_accessed = (
        x2.size * x2.dtype.itemsize
        + w_p.size * w_p.dtype.itemsize
        + b_p.size * b_p.dtype.itemsize
        + bp * n_heads * np_ * jnp.dtype(out_dtype).itemsize
    )

    out2 = pl.pallas_call(
        _mhl_kernel,
        out_shape=jax.ShapeDtypeStruct((bp, n_heads * np_), out_dtype),
        grid=grid,
        in_specs=[
            x_spec,
            pl.BlockSpec((None, tk, tn), lambda h, m, n, k: (h, k, n)),
            pl.BlockSpec((None, 1, tn), lambda h, m, n, k: (h, 0, n)),
        ],
        out_specs=pl.BlockSpec(
            (tm, tn), lambda h, m, n, k: (m, h * n_tiles + n)
        ),
        scratch_shapes=[pltpu.VMEM((tm, tn), jnp.float32)],
        compiler_params=pltpu.CompilerParams(
            dimension_semantics=("parallel", "parallel", "parallel", "arbitrary"),
            vmem_limit_bytes=32 * 1024 * 1024,
        ),
        cost_estimate=pl.CostEstimate(
            flops=flops, transcendentals=0, bytes_accessed=bytes_accessed
        ),
    )(x2, w_p, b_p)

    # Free trailing-dim split back to (Bp, H, Np), then trim the padding.
    return out2.reshape(bp, n_heads, np_)[:batch, :, :out_feats]


def _init_params(key, n_heads, in_feats, out_feats):
    """Deterministic kaiming_uniform-like init (matches parameter shapes)."""
    kw, kb = jax.random.split(key)
    bound = 1.0 / jnp.sqrt(jnp.float32(in_feats))
    weight = jax.random.uniform(
        kw, (n_heads, in_feats, out_feats), jnp.float32, -bound, bound)
    bias = jax.random.uniform(
        kb, (n_heads, 1, out_feats), jnp.float32, -bound, bound)
    return weight, bias


if __name__ == "__main__":
    key = jax.random.PRNGKey(0)
    k1, k2, k3 = jax.random.split(key, 3)

    # Case 1: lane-dense shapes, multi-tile N and a real K reduction
    # (tn=tk=128 -> 3 N-tiles, 2 K-steps), bf16 MXU path.
    B, H, K, N = 16, 4, 256, 384
    x = jax.random.normal(k1, (B, H, K), jnp.float32)
    w, b = _init_params(k2, H, K, N)

    y = multi_head_linear(x, w, b, compute_dtype=jnp.bfloat16,
                          tm=16, tn=128, tk=128, force_pallas=True)
    y = jax.block_until_ready(y)
    y_ref = _mhl_reference(x, w, b)
    assert y.shape == (B, H, N)
    assert jnp.allclose(y, y_ref, atol=3e-2, rtol=3e-2)

    # Case 1b: same shapes, f32 compute path, default (auto) tiles.
    y32 = multi_head_linear(x, w, b, compute_dtype=jnp.float32,
                            force_pallas=True)
    y32 = jax.block_until_ready(y32)
    assert jnp.allclose(y32, y_ref, atol=2e-2, rtol=2e-2)

    # Case 2: original tiny harness shapes -> exercises batch/in/out padding
    # up to (8, 128)-aligned tiles and padded-column trimming.
    B2, H2, K2, N2 = 8, 4, 32, 32
    x2 = jax.random.normal(k3, (B2, H2, K2), jnp.float32)
    w2, b2 = _init_params(k2, H2, K2, N2)
    y2 = multi_head_linear(x2, w2, b2, compute_dtype=jnp.float32,
                           force_pallas=True)
    y2 = jax.block_until_ready(y2)
    y2_ref = _mhl_reference(x2, w2, b2)
    assert y2.shape == (B2, H2, N2)
    assert jnp.allclose(y2, y2_ref, atol=2e-2, rtol=2e-2)

    # Case 3: 2-D input broadcast against every head's weight
    # (matches torch.matmul((B,K),(H,K,N)) -> transpose semantics).
    x3 = jax.random.normal(k1, (B, K), jnp.float32)
    y3 = multi_head_linear(x3, w, b, compute_dtype=jnp.float32,
                           force_pallas=True)
    y3 = jax.block_until_ready(y3)
    y3_ref = _mhl_reference(x3, w, b)
    assert y3.shape == (B, H, N)
    assert jnp.allclose(y3, y3_ref, atol=2e-2, rtol=2e-2)

    print("KERNEL_OK")
</pallas_src>

<mosaic_0001>
module attributes {stable_mosaic.version = 11 : i64} {
  func.func @_mhl_kernel(%arg0: i32, %arg1: i32, %arg2: i32, %arg3: i32, %arg4: memref<16x128xbf16, #tpu.memory_space<vmem>>, %arg5: memref<1x128x128xbf16, #tpu.memory_space<vmem>>, %arg6: memref<1x1x128xf32, #tpu.memory_space<vmem>>, %arg7: memref<16x128xf32, #tpu.memory_space<vmem>>, %arg8: memref<16x128xf32, #tpu.memory_space<vmem>>) attributes {dimension_semantics = [#tpu.dimension_semantics<parallel>, #tpu.dimension_semantics<parallel>, #tpu.dimension_semantics<parallel>, #tpu.dimension_semantics<arbitrary>], iteration_bounds = array<i64: 4, 1, 3, 2>, scalar_prefetch = 0 : i64, scratch_operands = 1 : i64, tpu.core_type = #tpu.core_type<tc>, window_params = [{transform_indices = @transform_0, window_bounds = array<i64: 16, 128>}, {transform_indices = @transform_1, window_bounds = array<i64: 1, 128, 128>}, {transform_indices = @transform_2, window_bounds = array<i64: 1, 1, 128>}, {transform_indices = @transform_3, window_bounds = array<i64: 16, 128>}]} {
    %c0_i32 = arith.constant 0 : i32
    %0 = arith.cmpi eq, %arg3, %c0_i32 : i32
    %1 = arith.extui %0 : i1 to i32
    %c0_i32_0 = arith.constant 0 : i32
    %2 = arith.cmpi ne, %1, %c0_i32_0 : i32
    scf.if %2 {
      %cst_10 = arith.constant 0.000000e+00 : f32
      %13 = vector.broadcast %cst_10 : f32 to vector<16x128xf32>
      %c0_11 = arith.constant 0 : index
      %c0_12 = arith.constant 0 : index
      %14 = vector.load %arg8[%c0_11, %c0_12] : memref<16x128xf32, #tpu.memory_space<vmem>>, vector<16x128xf32>
      tpu.vector_store %arg8[%c0_11, %c0_12], %13 {strides = array<i32>} : memref<16x128xf32, #tpu.memory_space<vmem>>, vector<16x128xf32>,
    } else {
    }
    %c0 = arith.constant 0 : index
    %c0_1 = arith.constant 0 : index
    %3 = vector.load %arg8[%c0, %c0_1] : memref<16x128xf32, #tpu.memory_space<vmem>>, vector<16x128xf32>
    %c0_2 = arith.constant 0 : index
    %c0_3 = arith.constant 0 : index
    %4 = vector.load %arg4[%c0_2, %c0_3] : memref<16x128xbf16, #tpu.memory_space<vmem>>, vector<16x128xbf16>
    %c0_4 = arith.constant 0 : index
    %c0_5 = arith.constant 0 : index
    %c0_6 = arith.constant 0 : index
    %5 = vector.load %arg5[%c0_4, %c0_5, %c0_6] : memref<1x128x128xbf16, #tpu.memory_space<vmem>>, vector<1x128x128xbf16>
    %6 = vector.shape_cast %5 : vector<1x128x128xbf16> to vector<128x128xbf16>
    %cst = arith.constant dense<0.000000e+00> : vector<16x128xf32>
    %7 = tpu.matmul %4, %6, %cst {dimension_numbers = #tpu.dot_dimension_numbers<[1], [0], [0], [1], [0, 0, 1, 1], [], []>} : vector<16x128xbf16>, vector<128x128xbf16>, vector<16x128xf32> -> vector<16x128xf32>
    %8 = arith.addf %3, %7 : vector<16x128xf32>
    %c0_7 = arith.constant 0 : index
    %c0_8 = arith.constant 0 : index
    %9 = vector.load %arg8[%c0_7, %c0_8] : memref<16x128xf32, #tpu.memory_space<vmem>>, vector<16x128xf32>
    tpu.vector_store %arg8[%c0_7, %c0_8], %8 {strides = array<i32>} : memref<16x128xf32, #tpu.memory_space<vmem>>, vector<16x128xf32>,
    %c1_i32 = arith.constant 1 : i32
    %10 = arith.cmpi eq, %arg3, %c1_i32 : i32
    %11 = arith.extui %10 : i1 to i32
    %c0_i32_9 = arith.constant 0 : i32
    %12 = arith.cmpi ne, %11, %c0_i32_9 : i32
    scf.if %12 {
      %c0_10 = arith.constant 0 : index
      %c0_11 = arith.constant 0 : index
      %13 = vector.load %arg8[%c0_10, %c0_11] : memref<16x128xf32, #tpu.memory_space<vmem>>, vector<16x128xf32>
      %c0_12 = arith.constant 0 : index
      %c0_13 = arith.constant 0 : index
      %c0_14 = arith.constant 0 : index
      %14 = vector.load %arg6[%c0_12, %c0_13, %c0_14] : memref<1x1x128xf32, #tpu.memory_space<vmem>>, vector<1x1x128xf32>
      %15 = vector.shape_cast %14 : vector<1x1x128xf32> to vector<1x128xf32>
      %16 = vector.broadcast %15 : vector<1x128xf32> to vector<16x128xf32>
      %17 = arith.addf %13, %16 : vector<16x128xf32>
      %c0_15 = arith.constant 0 : index
      %c0_16 = arith.constant 0 : index
      %18 = vector.load %arg7[%c0_15, %c0_16] : memref<16x128xf32, #tpu.memory_space<vmem>>, vector<16x128xf32>
      tpu.vector_store %arg7[%c0_15, %c0_16], %17 {strides = array<i32>} : memref<16x128xf32, #tpu.memory_space<vmem>>, vector<16x128xf32>,
    } else {
    }
    return
  }
  func.func @transform_0(%arg0: i32, %arg1: i32, %arg2: i32, %arg3: i32) -> (i32, i32) {
    %c2_i32 = arith.constant 2 : i32
    %0 = arith.muli %arg0, %c2_i32 : i32
    %1 = arith.addi %0, %arg3 : i32
    %c0_i32 = arith.constant 0 : i32
    return %arg1, %1 : i32, i32
  }
  func.func @transform_1(%arg0: i32, %arg1: i32, %arg2: i32, %arg3: i32) -> (i32, i32, i32) {
    %c0_i32 = arith.constant 0 : i32
    return %arg0, %arg3, %arg2 : i32, i32, i32
  }
  func.func @transform_2(%arg0: i32, %arg1: i32, %arg2: i32, %arg3: i32) -> (i32, i32, i32) {
    %c0_i32 = arith.constant 0 : i32
    %c0_i32_0 = arith.constant 0 : i32
    return %arg0, %c0_i32, %arg2 : i32, i32, i32
  }
  func.func @transform_3(%arg0: i32, %arg1: i32, %arg2: i32, %arg3: i32) -> (i32, i32) {
    %c3_i32 = arith.constant 3 : i32
    %0 = arith.muli %arg0, %c3_i32 : i32
    %1 = arith.addi %0, %arg2 : i32
    %c0_i32 = arith.constant 0 : i32
    return %arg1, %1 : i32, i32
  }
}

</mosaic_0001>

<bundles_post_ra>
// kernel: tpu_custom_call.1
= control target key start
LH: loop header
LB: loop body
LE: loop exit
PB: predicated region body
PF: predicated region fallthrough
CT: control target
= control target key end

     0   :  { %s1708_s0 = inlined_call_operand.hbm [shape: bf16[16,1024], index: 0, kind: input, shape index: {}]   ;;  %s1709_s1 = inlined_call_operand.hbm [shape: bf16[4,256,384], index: 1, kind: input, shape index: {}]   ;;  %s1710_s2 = inlined_call_operand.hbm [shape: f32[4,1,384], index: 2, kind: input, shape index: {}]   ;;  %s1711_s3 = inlined_call_operand.hbm [shape: f32[16,1536], index: 3, kind: output, shape index: {}]  }
   0x1   :  { %1736 = sst [smem:[#allocation27_spill]] %s1708_s0 }
   0x2   :  { %1737 = sst [smem:[#allocation28_spill]] %s1709_s1 }
   0x3   :  { %1738 = sst [smem:[#allocation29_spill]] %s1710_s2 }
   0x4   :  { %1739 = sst [smem:[#allocation30_spill]] %s1711_s3 }
   0x5   :  { %8 = vsyncpa [#allocation4], 0 }
   0x6   :  { %10 = vsyncpa [#allocation4 + $0x1], 0 }
   0x7   :  { %11 = vsyncpa [#allocation7], 0 }
   0x8   :  { %13 = vsyncpa [#allocation7 + $0x1], 0 }
   0x9   :  { %14 = vsyncpa [#allocation5], 0 }
   0xa   :  { %16 = vsyncpa [#allocation5 + $0x1], 0  ;;  %s1210_s12 = smov 0   ;;  %s1212_s13 = smov 0  }
   0xb   :  { %s1214_s14 = smov 0   ;;  %s1216_s15 = smov 0  }
   0xc   :  { %s1218_s16 = smov 0   ;;  %s1220_s17 = smov 0  }
   0xd   :  { %s1222_s18 = smov 0   ;;  %s1224_s19 = smov 0  }
   0xe   :  { %s1226_s20 = smov 0   ;;  %s1228_s21 = smov 0  }
   0xf   :  { %s1230_s22 = smov 0   ;;  %s1232_s23 = smov 0  }
  0x10   :  { %s1234_s24 = smov 0   ;;  %s1236_s25 = smov 0  }
  0x11   :  { %s1238_s26 = smov 0   ;;  %s1240_s27 = smov 0  }
  0x12   :  { %s1242_s28 = smov 0   ;;  %s1244_s29 = smov 0  }
  0x13   :  { %s1246_s30 = smov 0  }
  0x14 LB: > { %1740 = sst [smem:[#allocation14_spill]] %s1118_s16  ;;  %p1715_p0 = scmp.eq.s32.totalorder %s1174_s30, 0  ;;  %s1174_s30 = sphi %s1246_s30, %s22_s30   ;;  %s1170_s29 = sphi %s1244_s29, %s1820_s29   ;;  %s1166_s28 = sphi %s1242_s28, %s1819_s28   ;;  %s1162_s27 = sphi %s1240_s27, %s1818_s27   ;;  %s1158_s26 = sphi %s1238_s26, %s1817_s26   ;;  %s1154_s25 = sphi %s1236_s25, %s1805_s25   ;;  %s1150_s24 = sphi %s1234_s24, %s1804_s24   ;;  %s1146_s23 = sphi %s1232_s23, %s1816_s23   ;;  %s1142_s22 = sphi %s1230_s22, %s1815_s22   ;;  %s1138_s21 = sphi %s1228_s21, %s1803_s21   ;;  %s1134_s20 = sphi %s1226_s20, %s1814_s20   ;;  %s1130_s19 = sphi %s1224_s19, %s1813_s19   ;;  %s1126_s18 = sphi %s1222_s18, %s1802_s18   ;;  %s1122_s17 = sphi %s1220_s17, %s1812_s17   ;;  %s1118_s16 = sphi %s1218_s16, %s1811_s16   ;;  %s1114_s15 = sphi %s1216_s15, %s1800_s15   ;;  %s1110_s14 = sphi %s1214_s14, %s1810_s14   ;;  %s1106_s13 = sphi %s1212_s13, %s1808_s13   ;;  %s1102_s12 = sphi %s1210_s12, %s1806_s12  }
  0x15   : > { %1741 = sst [smem:[#allocation15_spill]] %s1130_s19  ;;  %p98_p1 = scmp.ne.s32.totalorder %s1134_s20, %s1130_s19 }
  0x16   : > { %1742 = sst [smem:[#allocation16_spill]] %s1142_s22  ;;  %p1714_p3 = scmp.lt.s32.totalorder %s1174_s30, 24 }
  0x17   : > { %1743 = sst [smem:[#allocation17_spill]] %s1150_s24  ;;  %p100_p4 = por %p98_p1, %p1715_p0 }
  0x18   : > { %1744 = sst [smem:[#allocation18_spill]] %s1154_s25  ;;  %s213_s5 = sand.u32 1, %s1174_s30  }
  0x19   : > { %1745 = sst [smem:[#allocation19_spill]] %s1158_s26  ;;  %s215_s6 = sand.u32 1, %s1134_s20  }
  0x1a   : > { %1746 = sst [smem:[#allocation20_spill]] %s1162_s27  ;;  %s638_s7 = sshll.u32 %s215_s6, 6 }
  0x1b   : > { %1747 = sst [smem:[#allocation21_spill]] %s1166_s28  ;;  %s692_s8 = smul.u32 48, %s1162_s27 }
  0x1c   : > { %s693_s9 = smul.u32 96, %s1170_s29  ;;  %s217_s11 = scalar_lea.vmem [#allocation6], %s638_s7 }
  0x1d   : > { %s223_s10 = sadd.s32 %s1166_s28, %s692_s8  ;;  %s228_s3 = sshll.u32 %s217_s11, 4  ;;  %s1319_s3 = int_to_ptr.vmem [resolvable:$true] %s228_s3 }
  0x1e   : > { %s225_s25 = sadd.s32 %s693_s9, %s223_s10  ;;  %p1323_p5 = pnand %p1714_p3, %p100_p4 }
  0x1f   : > { %s641_s26 = sshll.u32 %s225_s25, 6  ;;  %s1749_s1 = sld [smem:[#allocation28_spill]] }
  0x20   : > { %p643_p6 = scmp.ge.s32.totalorder %s1174_s30, 1  ;;  %s1333_s7 = scalar_lea.sflag [#allocation7], %s213_s5 }
  0x21   : > { %p892_p8 = pneg %p1323_p5 }
  0x25   : > { %s1330_s6 = scalar_lea.hbm %s1749_s1, %s641_s26  ;;  %s895_s26 = scalar_lea.hbm %s1749_s1, 24576 }
  0x26   : > { %s890_s25 = scalar_lea.hbm %s1330_s6, 1024  ;;  %p896_p11 = scmp.lt.u32.totalorder %s1330_s6, %s1749_s1 }
  0x27   : > { %p891_p7 = scmp.ne.s32.totalorder %s1330_s6, %s890_s25  ;;  %p897_p12 = scmp.lt.u32.totalorder %s895_s26, %s890_s25 }
  0x28   : > { %p899_p1 = scmp.lt.u32.totalorder %s890_s25, %s1330_s6 }
  0x29   : > { %p893_p9 = pnand %p892_p8, %p891_p7  ;;  %p898_p13 = por %p897_p12, %p896_p11 }
  0x2b   : > { %p894_p10 = pneg %p893_p9  ;;  %p900_p4 = por %p899_p1, %p898_p13 }
  0x2d   : > { %p901_p2 = pnand %p900_p4, %p894_p10 }
  0x2f   : > { %904 = shalt.err (!%p901_p2)
}
  0x30   : > { %s905_s5 = scalar_lea.vmem %s1319_s3, 1024  ;;  %s1176_s10 = smov [#allocation6]  }
  0x31   : > { %p906_p7 = scmp.ne.s32.totalorder %s1319_s3, %s905_s5  ;;  %s910_s11 = sshll.u32 %s1176_s10, 4  ;;  %s911_s11 = int_to_ptr.vmem [resolvable:$false] %s910_s11 }
  0x32   : > { %s912_s2 = scalar_lea.vmem %s911_s11, 2048  ;;  %p913_p0 = scmp.lt.s32.totalorder %s1319_s3, %s911_s11 }
  0x33   : > { %p908_p9 = pnand %p906_p7, %p892_p8  ;;  %p914_p11 = scmp.lt.s32.totalorder %s912_s2, %s905_s5 }
  0x35   : > { %p909_p3 = pneg %p908_p9  ;;  %p915_p12 = por %p914_p11, %p913_p0 }
  0x37   : > { %p916_p13 = pnand %p915_p12, %p909_p3 }
  0x39   : > { %919 = shalt.err (!%p916_p13)
}
  0x3a   : > { %s1177_s25 = smov 192   ;;  %s1716_s24 = smov 64  }
  0x3b   : > { %s1717_s26 = smov 4   ;;  %p255_p0 = scmp.lt.s32.totalorder %s1174_s30, 25 }
  0x3c   : > { %709 = dma.hbm_to_vmem [thread:$0]  (!%p1323_p5), %s1330_s6, 1024, %s1319_s3, %s1333_s7, %s1177_s25, %s1716_s24, %s1717_s26  }
  0x3d   : > { %p1366_p2 = pnand %p643_p6, %p255_p0  ;;  %s631_s9 = sshll.u32 %s1170_s29, 1 }
  0x3e   : > { %s1373_s10 = sadd.s32 %s1162_s27, %s631_s9  ;;  %p68_p3 = scmp.ne.s32.totalorder %s1146_s23, %s1142_s22 }
  0x3f   : > { %s1750_s8 = scalar_select %p1366_p2, 1, 0 }
  0x40   : > { %s188_s11 = sand.u32 1, %s1146_s23   ;;  %p1752_p10 = scmp.eq.s32.totalorder %s1174_s30, 0 }
  0x41   : > { %1751 = sst [smem:[#allocation22_spill]] %s1750_s8  ;;  %s635_s4 = sshll.u32 %s188_s11, 3 }
  0x42   : > { %p70_p1 = por %p1752_p10, %p68_p3  ;;  %s637_s2 = sshll.u32 %s1373_s10, 6 }
  0x43   : > { %s1753_s0 = sld [smem:[#allocation27_spill]]  ;;  %s192_s25 = scalar_lea.vmem [#allocation3], %s635_s4 }
  0x44   : > { %s203_s9 = sshll.u32 %s192_s25, 4  ;;  %p1754_p5 = scmp.lt.s32.totalorder %s1174_s30, 24  ;;  %s1394_s9 = int_to_ptr.vmem [resolvable:$true] %s203_s9 }
  0x45   : > { %s1396_s24 = scalar_lea.sflag [#allocation4], %s188_s11 }
  0x46   : > { %p1390_p6 = pnand %p1754_p5, %p70_p1 }
  0x48   : > { %p922_p7 = pneg %p1390_p6 }
  0x49   : > { %s1386_s6 = scalar_lea.hbm %s1753_s0, %s637_s2  ;;  %s925_s3 = scalar_lea.hbm %s1753_s0, 1024 }
  0x4a   : > { %s920_s1 = scalar_lea.hbm %s1386_s6, 128  ;;  %p926_p12 = scmp.lt.u32.totalorder %s1386_s6, %s1753_s0 }
  0x4b   : > { %p921_p4 = scmp.ne.s32.totalorder %s1386_s6, %s920_s1  ;;  %p927_p13 = scmp.lt.u32.totalorder %s925_s3, %s920_s1 }
  0x4c   : > { %p929_p3 = scmp.lt.u32.totalorder %s920_s1, %s1386_s6 }
  0x4d   : > { %p923_p9 = pnand %p922_p7, %p921_p4  ;;  %p928_p0 = por %p927_p13, %p926_p12 }
  0x4f   : > { %p924_p11 = pneg %p923_p9  ;;  %p930_p10 = por %p929_p3, %p928_p0 }
  0x51   : > { %p931_p1 = pnand %p930_p10, %p924_p11 }
  0x53   : > { %934 = shalt.err (!%p931_p1)
}
  0x54   : > { %s935_s11 = scalar_lea.vmem %s1394_s9, 128  ;;  %s1180_s4 = smov [#allocation3]  }
  0x55   : > { %p936_p5 = scmp.ne.s32.totalorder %s1394_s9, %s935_s11  ;;  %s940_s2 = sshll.u32 %s1180_s4, 4  ;;  %s941_s2 = int_to_ptr.vmem [resolvable:$false] %s940_s2 }
  0x56   : > { %s942_s26 = scalar_lea.vmem %s941_s2, 256  ;;  %p943_p8 = scmp.lt.s32.totalorder %s1394_s9, %s941_s2 }
  0x57   : > { %p938_p4 = pnand %p936_p5, %p922_p7  ;;  %p944_p12 = scmp.lt.s32.totalorder %s942_s26, %s935_s11 }
  0x59   : > { %p939_p9 = pneg %p938_p4  ;;  %p945_p13 = por %p944_p12, %p943_p8 }
  0x5b   : > { %p946_p0 = pnand %p945_p13, %p939_p9 }
  0x5d   : > { %949 = shalt.err (!%p946_p0)
}
  0x5e   : > { %s1181_s1 = smov 512   ;;  %s1756_s3 = smov 4  }
  0x5f   : > { %s1757_s25 = smov 64   ;;  %s1427_s5 = sadd.s32 4294967295, %s1174_s30  }
  0x60   : > { %706 = dma.hbm_to_vmem [thread:$0]  (!%p1390_p6), %s1386_s6, 128, %s1394_s9, %s1396_s24, %s1181_s1, %s1757_s25, %s1756_s3  }
  0x61   : > { %s37_s4 = sadd.s32 1, %s1162_s27  ;;  %s40_s2 = sadd.s32 1, %s1166_s28 }
  0x62   : > { %p38_p8 = scmp.ge.s32.totalorder %s37_s4, 2  ;;  %s48_s26 = sadd.s32 1, %s1170_s29 }
  0x63   : > { %p75_p7 = scmp.eq.s32.totalorder %s1427_s5, 0  ;;  %p1758_p6 = scmp.ne.s32.totalorder %s1142_s22, %s1138_s21 }
  0x64   : > { %s1822_s4 = smov (%p38_p8, %s37_s4), 0  ;;  %s1824_s2 = smov (!%p38_p8, %s40_s2), %s1166_s28 }
  0x65   : > { %p1442_p11 = por %p75_p7, %p1758_p6  ;;  %s85_s6 = ssub.s32 %s1162_s27, %s1822_s4 }
  0x66   : > { %p42_p3 = scmp.ge.s32.totalorder %s1824_s2, 3  ;;  %p1761_p10 = scmp.ne.s32.totalorder %s1130_s19, %s1126_s18 }
  0x67   : > { %s1759_s24 = scalar_select %p1442_p11, 1, 0 }
  0x68   : > { %p1453_p1 = por %p1761_p10, %p75_p7  ;;  %p126_p5 = scmp.ne.s32.totalorder %s1122_s17, %s1118_s16 }
  0x69   : > { %1760 = sst [smem:[#allocation23_spill]] %s1759_s24  ;;  %s1826_s2 = smov (%p42_p3, %s1824_s2), 0 }
  0x6a   : > { %s1762_s9 = scalar_select %p1453_p1, 1, 0 }
  0x6b   : > { %1764 = sst [smem:[#allocation25_spill]] %s1826_s2  ;;  %s1828_s26 = smov (!%p42_p3, %s48_s26), %s1170_s29 }
  0x6c   : > { %1763 = sst [smem:[#allocation24_spill]] %s1762_s9  ;;  %s87_s21 = ssub.s32 %s1166_s28, %s1826_s2 }
  0x6d   : > { %p1765_p4 = scmp.eq.s32.totalorder %s1174_s30, 0  ;;  %p50_p12 = scmp.ge.s32.totalorder %s1828_s26, 4 }
  0x6e   : > { %p132_p13 = scmp.ne.s32.totalorder %s1118_s16, %s1114_s15  ;;  %s142_s18 = smul.u32 3, %s1170_s29 }
  0x6f   : > { %p1467_p9 = por %p126_p5, %p1765_p4  ;;  %s151_s25 = sadd.s32 1, %s1110_s14 }
  0x70   : > { %s1830_s26 = smov (%p50_p12, %s1828_s26), 0  ;;  %p1479_p0 = por %p132_p13, %p75_p7 }
  0x71   : > { %s143_s1 = sadd.s32 %s1166_s28, %s142_s18  ;;  %s632_s15 = sshll.u32 %s1830_s26, 1 }
  0x72   : > { %s1767_s11 = scalar_select %p1479_p0, 1, 0 }
  0x73   : > { %s84_s0 = ssub.s32 %s1170_s29, %s1830_s26  ;;  %s55_s27 = sadd.s32 %s632_s15, %s1822_s4 }
  0x74   : > { %1768 = sst [smem:[#allocation26_spill]] %s1767_s11  ;;  %s86_s16 = sor.u32 %s85_s6, %s84_s0 }
  0x75   : > { %s57_s9 = ssub.s32 %s1373_s10, %s55_s27  ;;  %s88_s19 = sor.u32 %s87_s21, %s86_s16 }
  0x76   : > { %p59_p8 = scmp.eq.s32.totalorder %s57_s9, 0  ;;  %p89_p7 = scmp.eq.s32.totalorder %s88_s19, 0 }
  0x77   : > { %s116_s24 = sor.u32 %s87_s21, %s84_s0  ;;  %s144_s18 = smul.u32 3, %s1830_s26 }
  0x78   : > { %s1769_s28 = sadd.s32 1, %s1146_s23  ;;  %s1770_s22 = sadd.s32 1, %s1134_s20 }
  0x79   : > { %s1493_s11 = scalar_select %p59_p8, %s1146_s23, %s1769_s28  }
  0x7a   : > { %s1498_s8 = scalar_select %p89_p7, %s1134_s20, %s1770_s22  }
  0x7b   : > { %p117_p6 = scmp.eq.s32.totalorder %s116_s24, 0  ;;  %s145_s15 = sadd.s32 %s144_s18, %s1826_s2 }
  0x7c   : > { %s147_s6 = ssub.s32 %s143_s1, %s145_s15  ;;  %p161_p3 = scmp.ne.s32.totalorder %s1110_s14, %s1106_s13 }
  0x7d   : > { %s1771_s27 = sadd.s32 1, %s1122_s17  ;;  %p149_p10 = scmp.eq.s32.totalorder %s147_s6, 0 }
  0x7e   : > { %s1506_s16 = scalar_select %p117_p6, %s1122_s17, %s1771_s27  }
  0x7f   : > { %p162_p5 = scmp.eq.s32.totalorder %s1427_s5, 23  ;;  %p167_p4 = scmp.ne.s32.totalorder %s1106_s13, %s1102_s12 }
  0x80   : > { %s1772_s0 = sadd.s32 4294967294, %s1174_s30   ;;  %s240_s10 = sand.u32 1, %s1122_s17  }
  0x81   : > { %p168_p12 = scmp.eq.s32.totalorder %s1772_s0, 23  ;;  %p1516_p13 = por %p162_p5, %p161_p3 }
  0x82   : > { %s1514_s19 = scalar_select %p149_p10, %s1110_s14, %s151_s25  }
  0x83   : > { %s1773_s28 = scalar_select %p1516_p13, 1, 0 }
  0x84   : > { %p1520_p8 = por %p168_p12, %p167_p4  ;;  %s642_s24 = sshll.u32 %s143_s1, 4 }
  0x85   : > { %s1775_s18 = sld [smem:[#allocation29_spill]]  ;;  %s241_s25 = scalar_lea.vmem [#allocation8], %s240_s10 }
  0x86   : > { %s1774_s22 = scalar_select %p1520_p8, 1, 0 }
  0x87   : > { %s250_s6 = sshll.u32 %s241_s25, 4  ;;  %p1777_p7 = scmp.lt.s32.totalorder %s1174_s30, 24  ;;  %s251_s6 = int_to_ptr.vmem [resolvable:$true] %s250_s6 }
  0x89   : > { %p1534_p6 = pnand %p1777_p7, %p1467_p9 }
  0x8b   : > { %s1776_s2 = smov %s1775_s18  ;;  %s1528_s15 = scalar_lea.hbm %s1775_s18, %s642_s24 }
  0x8c   : > { %s950_s1 = scalar_lea.hbm %s1528_s15, 16  ;;  %p952_p10 = pneg %p1534_p6 }
  0x8d   : > { %p951_p3 = scmp.ne.s32.totalorder %s1528_s15, %s950_s1  ;;  %s955_s3 = scalar_lea.hbm %s1776_s2, 192 }
  0x8e   : > { %p956_p9 = scmp.lt.u32.totalorder %s1528_s15, %s1776_s2  ;;  %p957_p12 = scmp.lt.u32.totalorder %s955_s3, %s950_s1 }
  0x8f   : > { %p953_p5 = pnand %p952_p10, %p951_p3  ;;  %p959_p8 = scmp.lt.u32.totalorder %s950_s1, %s1528_s15 }
  0x90   : > { %p958_p7 = por %p957_p12, %p956_p9 }
  0x91   : > { %p954_p4 = pneg %p953_p5 }
  0x92   : > { %p960_p13 = por %p959_p8, %p958_p7 }
  0x94   : > { %p961_p0 = pnand %p960_p13, %p954_p4 }
  0x96   : > { %964 = shalt.err (!%p961_p0)
}
  0x97   : > { %s965_s21 = scalar_lea.vmem %s251_s6, 16  ;;  %s1182_s18 = smov [#allocation8]  }
  0x98   : > { %p966_p1 = scmp.ne.s32.totalorder %s251_s6, %s965_s21  ;;  %s970_s25 = sshll.u32 %s1182_s18, 4  ;;  %s971_s25 = int_to_ptr.vmem [resolvable:$false] %s970_s25 }
  0x99   : > { %s972_s0 = scalar_lea.vmem %s971_s25, 32  ;;  %p973_p11 = scmp.lt.s32.totalorder %s251_s6, %s971_s25 }
  0x9a   : > { %p968_p3 = pnand %p966_p1, %p952_p10  ;;  %p974_p2 = scmp.lt.s32.totalorder %s972_s0, %s965_s21 }
  0x9c   : > { %p969_p5 = pneg %p968_p3  ;;  %p975_p9 = por %p974_p2, %p973_p11 }
  0x9e   : > { %p976_p12 = pnand %p975_p9, %p969_p5 }
  0xa0   : > { %979 = shalt.err (!%p976_p12)
}
  0xa1   : > { %712 = dma.hbm_to_vmem [thread:$0]  (!%p1534_p6), %s1528_s15, 16, %s251_s6, %s1333_s7  }
  0xa2   : > { %s1779_s1 = sld [smem:[#allocation22_spill]] }
  0xa8   : > { %p1780_p0 = scmp.ne.s32.totalorder %s1779_s1, 0 }
  0xa9   : > { %s1781_s10 = sld [smem:[#allocation16_spill]] (!%p1780_p0) }
  0xaa   : > { %259 = sbr.rel (%p1780_p0) target bundleno = 505 (0x1f9), region = 32  ;;  %s1782_s3 = sld [smem:[#allocation23_spill]] (!%p1780_p0) }
  0xaf   : > { %s261_s24 = sand.u32 (!%p1780_p0), 1, %s1781_s10  }
  0xb0   : > { %s1563_s9 = sshll.u32 (!%p1780_p0), %s261_s24, 3  ;;  %s262_s18 = scalar_lea.sflag (!%p1780_p0), [#allocation4], %s261_s24 }
  0xb1   : > { %p1783_p1 = scmp.ne.s32.totalorder %s1782_s3, 0 }
  0xb3   : > { %1085 = dma.done.wait (%p1783_p1), %s262_s18, 128  }
  0xb4   : > { %1087 = vsyncadd (%p1783_p1), %s262_s18, 4294967168  ;;  %s1784_s27 = sld [smem:[#allocation15_spill]]  ;;  %s1785_s21 = sld [smem:[#allocation24_spill]] }
  0xb5   : > { %s270_s7 = sand.u32 1, %s1427_s5  }
  0xb6   : > { %s271_s0 = scalar_lea.sflag [#allocation7], %s270_s7 }
  0xba   : > { %s272_s15 = sand.u32 1, %s1784_s27   ;;  %p1786_p2 = scmp.ne.s32.totalorder %s1785_s21, 0 }
  0xbb   : > { %s645_s6 = sshll.u32 %s272_s15, 6 }
  0xbc   : > { %s1572_s1 = scalar_lea.vmem [#allocation6], %s645_s6 }
  0xbd   : > { %1089 = dma.done.wait (%p1786_p2), %s271_s0, 1024  }
  0xbe   : > { %1091 = vsyncadd (%p1786_p2), %s271_s0, 4294966272  ;;  %s1787_s10 = sld [smem:[#allocation14_spill]]  ;;  %s1788_s24 = sld [smem:[#allocation26_spill]] }
  0xc4   : > { %s281_s25 = sand.u32 1, %s1787_s10   ;;  %p1789_p11 = scmp.ne.s32.totalorder %s1788_s24, 0 }
  0xc5   : > { %s1579_s2 = scalar_lea.vmem [#allocation8], %s281_s25 }
  0xc6   : > { %1093 = dma.done.wait (%p1789_p11), %s271_s0, 16  }
  0xc7   : > { %1095 = vsyncadd (%p1789_p11), %s271_s0, 4294967280  ;;  %s311_s5 = sand.u32 1, %s1106_s13   ;;  %s1790_s27 = sld [smem:[#allocation17_spill]] }
  0xc8   : > { %s646_s3 = sshll.u32 %s311_s5, 4 }
  0xc9   : > { %s1588_s18 = scalar_lea.vmem [#allocation9], %s646_s3 }
  0xcd   : > { %p647_p13 = scmp.ne.s32.totalorder %s1790_s27, 0 }
  0xce   : > { %v1183_v0 = vmov (!%p647_p13), 0.0  }
  0xcf   : > { %325 = sbr.rel (%p647_p13) target bundleno = 214 (0xd6), region = 48  ;;  %326 = vst [vmem:[#allocation2] sm:$0xff] (!%p647_p13), %v1183_v0  ;;  %327 = vst [vmem:[#allocation2 + $0x8] sm:$0xff] (!%p647_p13), %v1183_v0 }
  0xd6 PF: > { %v881_v1 = vld [vmem:[%s1572_s1] sm:$0xff]   ;;  %v1184_v2 = vmov 0.0   ;;  %v882_v3 = vld [vmem:[%s1572_s1 + $0x8] sm:$0xff]   ;;  %vm1185_vm0 = vmmov 0   ;;  %v883_v4 = vld [vmem:[%s1572_s1 + $0x10] sm:$0xff]   ;;  %s1791_s25 = scalar_lea.vmem [#allocation3], %s1563_s9 }
  0xd7   : > { %672 = vmatprep.subr.bf16.mxu0 %v1184_v2  ;;  %688 = vmatprep.mubr.msk.bf16.mxu0 %vm1185_vm0, %v1184_v2  ;;  %v884_v5 = vld [vmem:[%s1572_s1 + $0x18] sm:$0xff]   ;;  %v885_v6 = vld [vmem:[%s1572_s1 + $0x20] sm:$0xff]   ;;  %v886_v7 = vld [vmem:[%s1572_s1 + $0x28] sm:$0xff]   ;;  %s1792_s21 = sld [smem:[#allocation17_spill]] }
  0xd8   : > { %673 = vmatpush3.bf16.msra.mxu0 %v881_v1  ;;  %v887_v8 = vld [vmem:[%s1572_s1 + $0x30] sm:$0xff]   ;;  %v888_v9 = vld [vmem:[%s1572_s1 + $0x38] sm:$0xff]   ;;  %v328_v11 = vld [vmem:[#allocation2] sm:$0xff] }
  0xd9   : > { %674 = vmatprep.subr.bf16.mxu0 %v1184_v2  ;;  %v889_v10 = vld [vmem:[%s1791_s25] sm:$0xff]   ;;  %v329_v13 = vld [vmem:[#allocation2 + $0x8] sm:$0xff] }
  0xdc   : > { %675 = vmatpush3.bf16.msra.mxu0 %v882_v3 }
  0xdd   : > { %676 = vmatprep.subr.bf16.mxu0 %v1184_v2  ;;  %p657_p8 = scmp.ne.s32.totalorder %s1792_s21, 1 }
  0xde   : > { %v658_v20 = vld [vmem:[%s1579_s2] ss:$0 sm:$0xff] (!%p657_p8) }
  0xe0   : > { %677 = vmatpush3.bf16.msra.mxu0 %v883_v4 }
  0xe1   : > { %678 = vmatprep.subr.bf16.mxu0 %v1184_v2 }
  0xe4   : > { %679 = vmatpush3.bf16.msra.mxu0 %v884_v5 }
  0xe5   : > { %680 = vmatprep.subr.bf16.mxu0 %v1184_v2 }
  0xe8   : > { %681 = vmatpush3.bf16.msra.mxu0 %v885_v6 }
  0xe9   : > { %682 = vmatprep.subr.bf16.mxu0 %v1184_v2 }
  0xec   : > { %683 = vmatpush3.bf16.msra.mxu0 %v886_v7 }
  0xed   : > { %684 = vmatprep.subr.bf16.mxu0 %v1184_v2 }
  0xf0   : > { %685 = vmatpush3.bf16.msra.mxu0 %v887_v8 }
  0xf1   : > { %686 = vmatprep.subr.bf16.mxu0 %v1184_v2 }
  0xf4   : > { %687 = vmatpush3.bf16.msra.mxu0 %v888_v9 }
  0xf7   : > { %689 = vmatmul.mubr.bf16.vlgmr.msra.gmra.mrb[0].mxu0 %v889_v10 }
 0x1c9   : > { %450 = sbr.rel (%p657_p8) target bundleno = 474 (0x1da), region = 52 }
 0x1ca   : > { %v436_v12 = vpop.f32.mrb[0].mxu0 }
 0x1cb   : > { %v443_v14 = vadd.f32 %v436_v12, %v328_v11  ;;  %v690_v15 = vpop.f32.mrb[1].mxu0 }
 0x1cc   : > { %v439_v16 = vpop.f32.mrb[2].mxu0 }
 0x1cd   : > { %445 = vst [vmem:[#allocation2] sm:$0xff] %v443_v14  ;;  %v444_v17 = vadd.f32 %v439_v16, %v329_v13  ;;  %v691_v18 = vpop.f32.mrb[3].mxu0 }
 0x1cf   : > { %446 = vst [vmem:[#allocation2 + $0x8] sm:$0xff] %v444_v17 }
 0x1d4   : > { %v451_v19 = vld [vmem:[#allocation2] sm:$0xff] }
 0x1d5   : > { %v460_v22 = vadd.f32 %v658_v20, %v451_v19 }
 0x1d6   : > { %v452_v21 = vld [vmem:[#allocation2 + $0x8] sm:$0xff] }
 0x1d7   : > { %v461_v23 = vadd.f32 %v658_v20, %v452_v21  ;;  %462 = vst [vmem:[%s1588_s18] sm:$0xff] %v460_v22 }
 0x1d9   : > { %463 = vst [vmem:[%s1588_s18 + $0x8] sm:$0xff] %v461_v23 }
 0x1da PF: > { %s1793_s9 = sld [smem:[#allocation19_spill]]  ;;  %s1794_s7 = sld [smem:[#allocation18_spill]] }
 0x1db   : > { %s482_s6 = sshll.u32 %s1588_s18, 4  ;;  %s1795_s24 = sld [smem:[#allocation30_spill]]  ;;  %s1608_s6 = int_to_ptr.vmem [resolvable:$true] %s482_s6 }
 0x1dc   : > { %s1617_s25 = scalar_lea.sflag [#allocation5], %s311_s5  ;;  %s980_s21 = scalar_lea.vmem %s1608_s6, 256 }
 0x1dd   : > { %p981_p6 = scmp.ne.s32.totalorder %s1608_s6, %s980_s21  ;;  %p1797_p10 = scmp.ne.s32.totalorder %s1773_s28, 0 }
 0x1de   : > { %s1186_s18 = smov [#allocation9]  }
 0x1df   : > { %p982_p4 = pnand %p981_p6, %p1797_p10 }
 0x1e0   : > { %s472_s15 = smul.u32 3, %s1793_s9  ;;  %s984_s9 = sshll.u32 %s1186_s18, 4  ;;  %s985_s9 = int_to_ptr.vmem [resolvable:$false] %s984_s9 }
 0x1e1   : > { %s1796_s3 = smov %s1795_s24  ;;  %p983_p7 = pneg %p982_p4 }
 0x1e2   : > { %s473_s0 = sadd.s32 %s1794_s7, %s472_s15  ;;  %s986_s7 = scalar_lea.vmem %s985_s9, 512 }
 0x1e3   : > { %s660_s2 = sshll.u32 %s473_s0, 7  ;;  %p987_p3 = scmp.lt.s32.totalorder %s1608_s6, %s985_s9 }
 0x1e4   : > { %s1613_s27 = scalar_lea.hbm %s1795_s24, %s660_s2  ;;  %p988_p5 = scmp.lt.s32.totalorder %s986_s7, %s980_s21 }
 0x1e6   : > { %p989_p9 = por %p988_p5, %p987_p3 }
 0x1e8   : > { %p990_p12 = pnand %p989_p9, %p983_p7 }
 0x1ea   : > { %993 = shalt.err (!%p990_p12)
}
 0x1eb   : > { %s994_s5 = scalar_lea.hbm %s1613_s27, 256  ;;  %s998_s2 = scalar_lea.hbm %s1796_s3, 3072 }
 0x1ec   : > { %p995_p0 = scmp.ne.s32.totalorder %s1613_s27, %s994_s5  ;;  %p999_p11 = scmp.lt.u32.totalorder %s1613_s27, %s1796_s3 }
 0x1ed   : > { %p1000_p13 = scmp.lt.u32.totalorder %s998_s2, %s994_s5  ;;  %p1002_p6 = scmp.lt.u32.totalorder %s994_s5, %s1613_s27 }
 0x1ee   : > { %p996_p1 = pnand %p995_p0, %p1797_p10 }
 0x1ef   : > { %p1001_p8 = por %p1000_p13, %p999_p11 }
 0x1f0   : > { %p997_p2 = pneg %p996_p1 }
 0x1f1   : > { %p1003_p4 = por %p1002_p6, %p1001_p8 }
 0x1f3   : > { %p1004_p7 = pnand %p1003_p4, %p997_p2 }
 0x1f5   : > { %1007 = shalt.err (!%p1004_p7)
}
 0x1f6   : > { %s1187_s24 = smov 128   ;;  %s1188_s21 = smov 1536  }
 0x1f7   : > { %s1189_s18 = smov 8  }
 0x1f8   : > { %701 = dma.vmem_to_hbm [thread:$0]  (%p1797_p10), %s1608_s6, 256, %s1613_s27, %s1617_s25, %s1187_s24, %s1188_s21, %s1189_s18  }
 0x1f9 PF: > { %p718_p3 = scmp.ge.s32.totalorder %s1174_s30, 2  ;;  %s497_s9 = sand.u32 1, %s1102_s12  }
 0x1fa   : > { %p1798_p5 = scmp.ne.s32.totalorder %s1774_s22, 0  ;;  %s498_s7 = scalar_lea.sflag [#allocation5], %s497_s9 }
 0x1fc   : > { %p714_p9 = pnand %p718_p3, %p1798_p5 }
 0x1fe   : > { %1097 = dma.done.wait (!%p714_p9), %s498_s7, 256  }
 0x1ff   : > { %1099 = vsyncadd (!%p714_p9), %s498_s7, 4294967040  ;;  %s22_s30 = sadd.s32 1, %s1174_s30   ;;  %s1800_s15 = sld [smem:[#allocation14_spill]] }
 0x200   : > { %p1646_p12 = scmp.ge.s32.totalorder %s22_s30, 26   ;;  %s1801_s28 = smov %s1506_s16 }
 0x201   : > { %s1802_s18 = sld [smem:[#allocation15_spill]]  ;;  %s1803_s21 = sld [smem:[#allocation16_spill]] }
 0x202   : > { %s1804_s24 = sld [smem:[#allocation20_spill]]  ;;  %s1805_s25 = sld [smem:[#allocation21_spill]] }
 0x203   : > { %s1806_s12 = smov %s1106_s13  ;;  %s1807_s6 = sld [smem:[#allocation25_spill]] }
 0x204   : > { %s1808_s13 = smov %s1110_s14  ;;  %s1809_s0 = smov %s1830_s26 }
 0x205   : > { %s1810_s14 = smov %s1514_s19  ;;  %s1811_s16 = smov %s1122_s17 }
 0x206   : > { %s1812_s17 = smov %s1801_s28  ;;  %s1813_s19 = smov %s1134_s20 }
 0x207   : > { %s1814_s20 = smov %s1498_s8  ;;  %s1815_s22 = smov %s1146_s23 }
 0x208   : > { %s1816_s23 = smov %s1493_s11  ;;  %s1817_s26 = smov %s1170_s29 }
 0x209   : > { %s1818_s27 = smov %s1822_s4  ;;  %s1819_s28 = smov %s1807_s6 }
 0x20a   : > { %s1820_s29 = smov %s1809_s0  ;;  %21 = sbr.rel (!%p1646_p12) target bundleno = 20 (0x14), region = 109 }
 0x211   :  { %503 = vsyncpa [#allocation4], 1 }
 0x212   :  { %505 = vsyncpa [#allocation4 + $0x1], 1 }
 0x213   :  { %506 = vsyncpa [#allocation7], 1 }
 0x214   :  { %508 = vsyncpa [#allocation7 + $0x1], 1 }
 0x215   :  { %509 = vsyncpa [#allocation5], 1 }
 0x216   :  { %511 = vsyncpa [#allocation5 + $0x1], 1 }

</bundles_post_ra>
